<compile_context>
chip_gen: v5e
topology: v5e:2x2
jax: 0.10.0
libtpu: 0.0.40
codegen_flags: <defaults>
</compile_context>

<pallas_src>
import functools
import math

import numpy as np
import jax
import jax.numpy as jnp
from jax.experimental import pallas as pl
from jax.experimental.pallas import tpu as pltpu


# ---------------------------------------------------------------------------
# Interpolation taps/weights (trace-time, static sizes).  Matches PyTorch's
# area_pixel_compute_source_index with align_corners=False and a forwarded
# scale_factor (recompute_scale_factor=None): src = (dst + 0.5)/scale - 0.5,
# clamped at 0.
# ---------------------------------------------------------------------------
def _linear_taps(in_size: int, scale: float):
    out_size = int(math.floor(float(in_size) * float(scale)))
    dst = np.arange(out_size, dtype=np.float64)
    src = np.maximum((dst + 0.5) / float(scale) - 0.5, 0.0)
    i0 = np.minimum(np.floor(src).astype(np.int64), in_size - 1)
    i1 = np.minimum(i0 + 1, in_size - 1)
    lam = np.clip(src - i0, 0.0, 1.0).astype(np.float32)
    return out_size, i0.astype(np.int32), i1.astype(np.int32), lam


def _linear_weight_np(in_size: int, scale: float) -> np.ndarray:
    out_size, i0, i1, lam = _linear_taps(in_size, scale)
    w = np.zeros((out_size, in_size), np.float32)
    rows = np.arange(out_size)
    np.add.at(w, (rows, i0), 1.0 - lam)
    np.add.at(w, (rows, i1), lam)          # i0 == i1 edge handled correctly
    return w


# ---------------------------------------------------------------------------
# Kernel
# ---------------------------------------------------------------------------
def _trilinear_kernel(x_ref, wh_ref, ww_ref, o_ref, *,
                      batch, d_in, h_out, w_out, d_taps,
                      compute_dtype, fast, flat_out):
    # x_ref : (batch*d_in, Hin, Win)        one slab batch of the fused (N*C) axis
    # fast  : wh_ref (Hin, Hout), ww_ref (Win, Wout)   [canonical (K, N)]
    # slow  : wh_ref (Hout, Hin), ww_ref (Wout, Win)   [broadcast fallback]
    # o_ref : (batch, Dout, Hout, Wout) or (batch, Dout, Hout*Wout) if flat_out
    g = batch * d_in
    h_in = x_ref.shape[1]
    w_in = x_ref.shape[2]

    if fast:
        # --- H axis on the MXU: canonical 2-D matmul on the (small) transposed
        #     input block.  No weight broadcast, no batched K=Hin pushes.
        xT = jnp.swapaxes(x_ref[...], 1, 2)                      # (g, Win, Hin)
        lhs1 = xT.reshape(g * w_in, h_in).astype(compute_dtype)
        th = jax.lax.dot_general(
            lhs1, wh_ref[...], (((1,), (0,)), ((), ())),
            preferred_element_type=jnp.float32)                  # (g*Win, Hout)
        # --- one small lane<->sublane transpose (XLU slot has slack)
        th = jnp.swapaxes(th.reshape(g, w_in, h_out), 1, 2)      # (g, Hout, Win)
        # --- W axis: big flat canonical matmul, weight already (Win, Wout)
        lhs2 = th.reshape(g * h_out, w_in).astype(compute_dtype)
        t2 = jax.lax.dot_general(
            lhs2, ww_ref[...], (((1,), (0,)), ((), ())),
            preferred_element_type=jnp.float32)                  # (g*Hout, Wout)
    else:
        # Shape-robust fallback for awkward alignments (slower: broadcasts the
        # weights).  Only traced when Win % 8 != 0 or Hout % 8 != 0.
        x = x_ref[...].astype(compute_dtype)
        wh_b = jnp.broadcast_to(wh_ref[...], (g, h_out, h_in))
        th = jax.lax.dot_general(wh_b, x, (((2,), (1,)), ((0,), (0,))),
                                 preferred_element_type=jnp.float32)
        ww_b = jnp.broadcast_to(ww_ref[...], (g, w_out, w_in))
        t2 = jax.lax.dot_general(th.astype(compute_dtype), ww_b,
                                 (((2,), (2,)), ((0,), (0,))),
                                 preferred_element_type=jnp.float32)

    t2 = t2.reshape(batch, d_in, h_out, w_out)   # leading-dim split (layout safe)

    # --- D axis: 2-tap lerp on the VPU with trace-time-constant taps.
    # (Unrolled: Dout is small here.  For Dout beyond a few tens this should
    #  become a lax.fori_loop over a VMEM-staged t2 to bound live ranges.)
    for q, (i0, i1, lam) in enumerate(d_taps):
        if i0 == i1 or lam == 0.0:
            sl = t2[:, i0]
        else:
            sl = (1.0 - lam) * t2[:, i0] + lam * t2[:, i1]
        sl = sl.astype(o_ref.dtype)
        if flat_out:
            o_ref[:, q, :] = sl.reshape(batch, h_out * w_out)
        else:
            o_ref[:, q, :, :] = sl


# ---------------------------------------------------------------------------
# VMEM budgeting / slab-batch selection (generation aware)
# ---------------------------------------------------------------------------
def _ceil_to(v: int, m: int) -> int:
    return ((v + m - 1) // m) * m


@functools.lru_cache(maxsize=1)
def _vmem_capacity_bytes() -> int:
    try:
        cap = int(pltpu.get_tpu_info().vmem_capacity_bytes)
    except Exception:
        cap = 64 * (1 << 20)          # conservative: v7x per-TensorCore VMEM
    return max(cap, 32 * (1 << 20))


def _per_slab_vmem_bytes(d_in, h_in, w_in, d_out, h_out, w_out,
                         in_itemsize, mxu_bf16) -> int:
    cb = 2 if mxu_bf16 else 4
    in_blk = d_in * _ceil_to(h_in, 8) * _ceil_to(w_in, 128) * in_itemsize
    out_blk = d_out * _ceil_to(h_out, 8) * _ceil_to(w_out, 128) * in_itemsize
    x_t = d_in * _ceil_to(w_in, 8) * _ceil_to(h_in, 128) * (in_itemsize + cb)
    th = d_in * _ceil_to(w_in, 8) * _ceil_to(h_out, 128) * 4
    th_t = d_in * _ceil_to(h_out, 8) * _ceil_to(w_in, 128) * (4 + cb)
    t2 = d_in * _ceil_to(h_out, 8) * _ceil_to(w_out, 128) * 4
    sl = _ceil_to(h_out, 8) * _ceil_to(w_out, 128) * 4
    # input & output blocks are double-buffered by the Pallas pipeline
    return 2 * in_blk + 2 * out_blk + x_t + th + th_t + t2 + sl


def _choose_batch(nc: int, per_slab: int, budget: int, two_cores: bool) -> int:
    cap = max(1, min(nc, budget // max(per_slab, 1)))
    best_b, best_score = 1, None
    for b in range(1, cap + 1):
        gl = -(-nc // b)                                  # grid length (padded)
        if two_cores:
            # even grid so both TensorCores stay busy; prefer >= 4 steps.
            score = (gl % 2 == 0, gl >= 4, nc % b == 0, b)
        else:
            # single TensorCore: biggest feasible slab, prefer exact divisors.
            score = (nc % b == 0, b)
        if best_score is None or score > best_score:
            best_score, best_b = score, b
    return best_b


# ---------------------------------------------------------------------------
# Wrapper
# ---------------------------------------------------------------------------
@functools.partial(jax.jit, static_argnames=("scale_factor", "mxu_bf16"))
def interpolate_trilinear(x: jnp.ndarray,
                          scale_factor=(2.0, 2.0, 2.0),
                          *, mxu_bf16: bool = True) -> jnp.ndarray:
    """x: (N, C, D, H, W); trilinear upsample, align_corners=False."""
    if not isinstance(scale_factor, tuple):
        scale_factor = (float(scale_factor),) * 3
    N, C, Din, Hin, Win = x.shape
    sd, sh, sw = (float(s) for s in scale_factor)

    Dout, d_i0, d_i1, d_lam = _linear_taps(Din, sd)
    wh_np = _linear_weight_np(Hin, sh)                    # (Hout, Hin)
    ww_np = _linear_weight_np(Win, sw)                    # (Wout, Win)
    Hout, Wout = int(wh_np.shape[0]), int(ww_np.shape[0])
    d_taps = tuple(zip(d_i0.tolist(), d_i1.tolist(), d_lam.tolist()))

    compute_dtype = jnp.bfloat16 if mxu_bf16 else jnp.float32
    fast = (Win % 8 == 0) and (Hout % 8 == 0)
    # Canonical (K, N) orientation for the fast path; pre-cast on the host so
    # the (tiny, constant-index-map) weight blocks are fetched once, in the
    # MXU compute dtype.
    wh_arr = jnp.asarray(np.ascontiguousarray(wh_np.T) if fast else wh_np,
                         dtype=compute_dtype)
    ww_arr = jnp.asarray(np.ascontiguousarray(ww_np.T) if fast else ww_np,
                         dtype=compute_dtype)

    nc = N * C

    # ----- generation-aware VMEM budgeting & slab-batch selection ----------
    vmem_cap = _vmem_capacity_bytes()
    two_tc = vmem_cap <= 96 * (1 << 20)       # v7x: 64 MiB/TC, 2 TCs per chip
    vmem_limit = max(min(vmem_cap - (16 << 20), (vmem_cap * 4) // 5),
                     24 * (1 << 20))
    fixed = 2 * (wh_arr.size * wh_arr.dtype.itemsize
                 + ww_arr.size * ww_arr.dtype.itemsize) + (1 << 20)
    per_slab = _per_slab_vmem_bytes(Din, Hin, Win, Dout, Hout, Wout,
                                    x.dtype.itemsize, mxu_bf16)
    budget = max((vmem_limit * 55) // 100 - fixed, 1)
    B = _choose_batch(nc, per_slab, budget, two_tc)
    vmem_limit = max(vmem_limit,
                     min(vmem_cap - (8 << 20),
                         B * per_slab + fixed + (4 << 20)))
    # TODO(synk): if even B=1 exceeds the budget (very large D*H*W slabs), add
    # a second grid axis over Din chunks with a 1-row halo for the D-lerp.

    grid_len = pl.cdiv(nc, B)
    nc_pad = grid_len * B

    x3 = x.reshape(nc * Din, Hin, Win)
    if nc_pad != nc:                           # ragged nc: pad instead of B=1
        x3 = jnp.pad(x3, ((0, (nc_pad - nc) * Din), (0, 0), (0, 0)))

    # Lane-dense output store: flatten (Hout, Wout) when Wout alone is not a
    # multiple of 128 but Hout*Wout is (avoids Dout masked vst.msk stores).
    flat_out = (Wout % 128 != 0) and ((Hout * Wout) % 128 == 0)
    if flat_out:
        out_shape = jax.ShapeDtypeStruct((nc_pad, Dout, Hout * Wout), x.dtype)
        out_spec = pl.BlockSpec((B, Dout, Hout * Wout), lambda i: (i, 0, 0))
    else:
        out_shape = jax.ShapeDtypeStruct((nc_pad, Dout, Hout, Wout), x.dtype)
        out_spec = pl.BlockSpec((B, Dout, Hout, Wout), lambda i: (i, 0, 0, 0))

    itemsize = x.dtype.itemsize
    flops = (2 * nc * Din * Win * Hin * Hout          # H-axis matmul
             + 2 * nc * Din * Hout * Win * Wout       # W-axis matmul
             + 3 * nc * Dout * Hout * Wout)           # D-axis lerp
    bytes_accessed = (itemsize * (x.size + nc * Dout * Hout * Wout)
                      + wh_arr.size * wh_arr.dtype.itemsize
                      + ww_arr.size * ww_arr.dtype.itemsize)

    kernel = functools.partial(
        _trilinear_kernel, batch=B, d_in=Din, h_out=Hout, w_out=Wout,
        d_taps=d_taps, compute_dtype=compute_dtype, fast=fast,
        flat_out=flat_out)

    out = pl.pallas_call(
        kernel,
        out_shape=out_shape,
        grid_spec=pltpu.PrefetchScalarGridSpec(
            num_scalar_prefetch=0,
            grid=(grid_len,),
            in_specs=[
                pl.BlockSpec((B * Din, Hin, Win), lambda i: (i, 0, 0)),
                # Constant index maps -> weights fetched once by the pipeline.
                pl.BlockSpec(wh_arr.shape, lambda i: (0, 0)),
                pl.BlockSpec(ww_arr.shape, lambda i: (0, 0)),
            ],
            out_specs=out_spec,
        ),
        compiler_params=pltpu.CompilerParams(
            dimension_semantics=("parallel",),
            vmem_limit_bytes=int(vmem_limit)),
        cost_estimate=pl.CostEstimate(flops=int(flops), transcendentals=0,
                                      bytes_accessed=int(bytes_accessed)),
    )(x3, wh_arr, ww_arr)

    out = out.reshape(nc_pad, Dout, Hout, Wout)[:nc]
    return out.reshape(N, C, Dout, Hout, Wout)


if __name__ == "__main__":
    key = jax.random.PRNGKey(0)
    # Small NCDHW input (trilinear => 5-D).  W chosen so the upsampled last
    # dim (Wout = 128) is lane-dense on TPU.
    N, C, D, H, W = 2, 4, 4, 8, 64
    scale = (2.0, 2.0, 2.0)
    x = jax.random.normal(key, (N, C, D, H, W), dtype=jnp.float32)

    # Pure-JAX reference with identical align_corners=False semantics.
    wd = jnp.asarray(_linear_weight_np(D, scale[0]))
    wh = jnp.asarray(_linear_weight_np(H, scale[1]))
    ww = jnp.asarray(_linear_weight_np(W, scale[2]))
    ref = jnp.einsum("ncdhw,qd,ph,ow->ncqpo", x, wd, wh, ww,
                     precision=jax.lax.Precision.HIGHEST)

    # Exact-f32 MXU path (parity with the f32 reference).
    out_f32 = jax.block_until_ready(
        interpolate_trilinear(x, scale_factor=scale, mxu_bf16=False))
    # Default bf16-MXU path (perf; f32 accumulation, ~1e-3 relative error).
    out_bf16 = jax.block_until_ready(
        interpolate_trilinear(x, scale_factor=scale))

    expect = (N, C, int(D * scale[0]), int(H * scale[1]), int(W * scale[2]))
    assert out_f32.shape == expect and out_bf16.shape == expect
    assert jnp.allclose(out_f32, ref, atol=1e-4, rtol=1e-4), \
        float(jnp.max(jnp.abs(out_f32 - ref)))
    assert jnp.allclose(out_bf16, ref, atol=5e-2, rtol=5e-2), \
        float(jnp.max(jnp.abs(out_bf16 - ref)))
    print("KERNEL_OK")
</pallas_src>

<mosaic_0001>
module attributes {stable_mosaic.version = 11 : i64} {
  func.func @_trilinear_kernel(%arg0: i32, %arg1: memref<8x8x64xf32, #tpu.memory_space<vmem>>, %arg2: memref<8x16xf32, #tpu.memory_space<vmem>>, %arg3: memref<64x128xf32, #tpu.memory_space<vmem>>, %arg4: memref<2x8x16x128xf32, #tpu.memory_space<vmem>>) attributes {dimension_semantics = [#tpu.dimension_semantics<parallel>], iteration_bounds = array<i64: 4>, scalar_prefetch = 0 : i64, scratch_operands = 0 : i64, tpu.core_type = #tpu.core_type<tc>, window_params = [{transform_indices = @transform_0, window_bounds = array<i64: 8, 8, 64>}, {pipeline_mode = #tpu.pipeline_mode<synchronous>, transform_indices = @transform_1, window_bounds = array<i64: 8, 16>}, {pipeline_mode = #tpu.pipeline_mode<synchronous>, transform_indices = @transform_2, window_bounds = array<i64: 64, 128>}, {transform_indices = @transform_3, window_bounds = array<i64: 2, 8, 16, 128>}]} {
    %c0 = arith.constant 0 : index
    %c0_0 = arith.constant 0 : index
    %c0_1 = arith.constant 0 : index
    %0 = vector.load %arg1[%c0, %c0_0, %c0_1] : memref<8x8x64xf32, #tpu.memory_space<vmem>>, vector<8x8x64xf32>
    %1 = tpu.transpose %0, [0, 2, 1] : vector<8x8x64xf32> -> vector<8x64x8xf32>
    %2 = vector.shape_cast %1 : vector<8x64x8xf32> to vector<512x8xf32>
    %c0_2 = arith.constant 0 : index
    %c0_3 = arith.constant 0 : index
    %3 = vector.load %arg2[%c0_2, %c0_3] : memref<8x16xf32, #tpu.memory_space<vmem>>, vector<8x16xf32>
    %cst = arith.constant dense<0.000000e+00> : vector<512x16xf32>
    %4 = tpu.matmul %2, %3, %cst {dimension_numbers = #tpu.dot_dimension_numbers<[1], [0], [0], [1], [0, 0, 1, 1], [], []>} : vector<512x8xf32>, vector<8x16xf32>, vector<512x16xf32> -> vector<512x16xf32>
    %5 = vector.shape_cast %4 : vector<512x16xf32> to vector<8x64x16xf32>
    %6 = tpu.transpose %5, [0, 2, 1] : vector<8x64x16xf32> -> vector<8x16x64xf32>
    %7 = vector.shape_cast %6 : vector<8x16x64xf32> to vector<128x64xf32>
    %c0_4 = arith.constant 0 : index
    %c0_5 = arith.constant 0 : index
    %8 = vector.load %arg3[%c0_4, %c0_5] : memref<64x128xf32, #tpu.memory_space<vmem>>, vector<64x128xf32>
    %cst_6 = arith.constant dense<0.000000e+00> : vector<128x128xf32>
    %9 = tpu.matmul %7, %8, %cst_6 {dimension_numbers = #tpu.dot_dimension_numbers<[1], [0], [0], [1], [0, 0, 1, 1], [], []>} : vector<128x64xf32>, vector<64x128xf32>, vector<128x128xf32> -> vector<128x128xf32>
    %10 = vector.shape_cast %9 : vector<128x128xf32> to vector<2x4x16x128xf32>
    %11 = vector.extract_strided_slice %10 {offsets = [0, 0, 0, 0], sizes = [2, 1, 16, 128], strides = [1, 1, 1, 1]} : vector<2x4x16x128xf32> to vector<2x1x16x128xf32>
    %12 = vector.shape_cast %11 : vector<2x1x16x128xf32> to vector<2x16x128xf32>
    %c0_7 = arith.constant 0 : index
    %c0_8 = arith.constant 0 : index
    %c0_9 = arith.constant 0 : index
    %c0_10 = arith.constant 0 : index
    %13 = vector.load %arg4[%c0_7, %c0_8, %c0_9, %c0_10] : memref<2x8x16x128xf32, #tpu.memory_space<vmem>>, vector<2x1x16x128xf32>
    %14 = vector.shape_cast %13 : vector<2x1x16x128xf32> to vector<2x16x128xf32>
    %15 = vector.shape_cast %12 : vector<2x16x128xf32> to vector<2x1x16x128xf32>
    tpu.vector_store %arg4[%c0_7, %c0_8, %c0_9, %c0_10], %15 {strides = array<i32>} : memref<2x8x16x128xf32, #tpu.memory_space<vmem>>, vector<2x1x16x128xf32>,
    %16 = vector.extract_strided_slice %10 {offsets = [0, 0, 0, 0], sizes = [2, 1, 16, 128], strides = [1, 1, 1, 1]} : vector<2x4x16x128xf32> to vector<2x1x16x128xf32>
    %17 = vector.shape_cast %16 : vector<2x1x16x128xf32> to vector<2x16x128xf32>
    %cst_11 = arith.constant 7.500000e-01 : f32
    %18 = vector.broadcast %cst_11 : f32 to vector<2x16x128xf32>
    %19 = arith.mulf %18, %17 : vector<2x16x128xf32>
    %20 = vector.extract_strided_slice %10 {offsets = [0, 1, 0, 0], sizes = [2, 1, 16, 128], strides = [1, 1, 1, 1]} : vector<2x4x16x128xf32> to vector<2x1x16x128xf32>
    %21 = vector.shape_cast %20 : vector<2x1x16x128xf32> to vector<2x16x128xf32>
    %cst_12 = arith.constant 2.500000e-01 : f32
    %22 = vector.broadcast %cst_12 : f32 to vector<2x16x128xf32>
    %23 = arith.mulf %22, %21 : vector<2x16x128xf32>
    %24 = arith.addf %19, %23 : vector<2x16x128xf32>
    %c0_13 = arith.constant 0 : index
    %c1 = arith.constant 1 : index
    %c0_14 = arith.constant 0 : index
    %c0_15 = arith.constant 0 : index
    %25 = vector.load %arg4[%c0_13, %c1, %c0_14, %c0_15] : memref<2x8x16x128xf32, #tpu.memory_space<vmem>>, vector<2x1x16x128xf32>
    %26 = vector.shape_cast %25 : vector<2x1x16x128xf32> to vector<2x16x128xf32>
    %27 = vector.shape_cast %24 : vector<2x16x128xf32> to vector<2x1x16x128xf32>
    tpu.vector_store %arg4[%c0_13, %c1, %c0_14, %c0_15], %27 {strides = array<i32>} : memref<2x8x16x128xf32, #tpu.memory_space<vmem>>, vector<2x1x16x128xf32>,
    %28 = vector.extract_strided_slice %10 {offsets = [0, 0, 0, 0], sizes = [2, 1, 16, 128], strides = [1, 1, 1, 1]} : vector<2x4x16x128xf32> to vector<2x1x16x128xf32>
    %29 = vector.shape_cast %28 : vector<2x1x16x128xf32> to vector<2x16x128xf32>
    %cst_16 = arith.constant 2.500000e-01 : f32
    %30 = vector.broadcast %cst_16 : f32 to vector<2x16x128xf32>
    %31 = arith.mulf %30, %29 : vector<2x16x128xf32>
    %32 = vector.extract_strided_slice %10 {offsets = [0, 1, 0, 0], sizes = [2, 1, 16, 128], strides = [1, 1, 1, 1]} : vector<2x4x16x128xf32> to vector<2x1x16x128xf32>
    %33 = vector.shape_cast %32 : vector<2x1x16x128xf32> to vector<2x16x128xf32>
    %cst_17 = arith.constant 7.500000e-01 : f32
    %34 = vector.broadcast %cst_17 : f32 to vector<2x16x128xf32>
    %35 = arith.mulf %34, %33 : vector<2x16x128xf32>
    %36 = arith.addf %31, %35 : vector<2x16x128xf32>
    %c0_18 = arith.constant 0 : index
    %c2 = arith.constant 2 : index
    %c0_19 = arith.constant 0 : index
    %c0_20 = arith.constant 0 : index
    %37 = vector.load %arg4[%c0_18, %c2, %c0_19, %c0_20] : memref<2x8x16x128xf32, #tpu.memory_space<vmem>>, vector<2x1x16x128xf32>
    %38 = vector.shape_cast %37 : vector<2x1x16x128xf32> to vector<2x16x128xf32>
    %39 = vector.shape_cast %36 : vector<2x16x128xf32> to vector<2x1x16x128xf32>
    tpu.vector_store %arg4[%c0_18, %c2, %c0_19, %c0_20], %39 {strides = array<i32>} : memref<2x8x16x128xf32, #tpu.memory_space<vmem>>, vector<2x1x16x128xf32>,
    %40 = vector.extract_strided_slice %10 {offsets = [0, 1, 0, 0], sizes = [2, 1, 16, 128], strides = [1, 1, 1, 1]} : vector<2x4x16x128xf32> to vector<2x1x16x128xf32>
    %41 = vector.shape_cast %40 : vector<2x1x16x128xf32> to vector<2x16x128xf32>
    %cst_21 = arith.constant 7.500000e-01 : f32
    %42 = vector.broadcast %cst_21 : f32 to vector<2x16x128xf32>
    %43 = arith.mulf %42, %41 : vector<2x16x128xf32>
    %44 = vector.extract_strided_slice %10 {offsets = [0, 2, 0, 0], sizes = [2, 1, 16, 128], strides = [1, 1, 1, 1]} : vector<2x4x16x128xf32> to vector<2x1x16x128xf32>
    %45 = vector.shape_cast %44 : vector<2x1x16x128xf32> to vector<2x16x128xf32>
    %cst_22 = arith.constant 2.500000e-01 : f32
    %46 = vector.broadcast %cst_22 : f32 to vector<2x16x128xf32>
    %47 = arith.mulf %46, %45 : vector<2x16x128xf32>
    %48 = arith.addf %43, %47 : vector<2x16x128xf32>
    %c0_23 = arith.constant 0 : index
    %c3 = arith.constant 3 : index
    %c0_24 = arith.constant 0 : index
    %c0_25 = arith.constant 0 : index
    %49 = vector.load %arg4[%c0_23, %c3, %c0_24, %c0_25] : memref<2x8x16x128xf32, #tpu.memory_space<vmem>>, vector<2x1x16x128xf32>
    %50 = vector.shape_cast %49 : vector<2x1x16x128xf32> to vector<2x16x128xf32>
    %51 = vector.shape_cast %48 : vector<2x16x128xf32> to vector<2x1x16x128xf32>
    tpu.vector_store %arg4[%c0_23, %c3, %c0_24, %c0_25], %51 {strides = array<i32>} : memref<2x8x16x128xf32, #tpu.memory_space<vmem>>, vector<2x1x16x128xf32>,
    %52 = vector.extract_strided_slice %10 {offsets = [0, 1, 0, 0], sizes = [2, 1, 16, 128], strides = [1, 1, 1, 1]} : vector<2x4x16x128xf32> to vector<2x1x16x128xf32>
    %53 = vector.shape_cast %52 : vector<2x1x16x128xf32> to vector<2x16x128xf32>
    %cst_26 = arith.constant 2.500000e-01 : f32
    %54 = vector.broadcast %cst_26 : f32 to vector<2x16x128xf32>
    %55 = arith.mulf %54, %53 : vector<2x16x128xf32>
    %56 = vector.extract_strided_slice %10 {offsets = [0, 2, 0, 0], sizes = [2, 1, 16, 128], strides = [1, 1, 1, 1]} : vector<2x4x16x128xf32> to vector<2x1x16x128xf32>
    %57 = vector.shape_cast %56 : vector<2x1x16x128xf32> to vector<2x16x128xf32>
    %cst_27 = arith.constant 7.500000e-01 : f32
    %58 = vector.broadcast %cst_27 : f32 to vector<2x16x128xf32>
    %59 = arith.mulf %58, %57 : vector<2x16x128xf32>
    %60 = arith.addf %55, %59 : vector<2x16x128xf32>
    %c0_28 = arith.constant 0 : index
    %c4 = arith.constant 4 : index
    %c0_29 = arith.constant 0 : index
    %c0_30 = arith.constant 0 : index
    %61 = vector.load %arg4[%c0_28, %c4, %c0_29, %c0_30] : memref<2x8x16x128xf32, #tpu.memory_space<vmem>>, vector<2x1x16x128xf32>
    %62 = vector.shape_cast %61 : vector<2x1x16x128xf32> to vector<2x16x128xf32>
    %63 = vector.shape_cast %60 : vector<2x16x128xf32> to vector<2x1x16x128xf32>
    tpu.vector_store %arg4[%c0_28, %c4, %c0_29, %c0_30], %63 {strides = array<i32>} : memref<2x8x16x128xf32, #tpu.memory_space<vmem>>, vector<2x1x16x128xf32>,
    %64 = vector.extract_strided_slice %10 {offsets = [0, 2, 0, 0], sizes = [2, 1, 16, 128], strides = [1, 1, 1, 1]} : vector<2x4x16x128xf32> to vector<2x1x16x128xf32>
    %65 = vector.shape_cast %64 : vector<2x1x16x128xf32> to vector<2x16x128xf32>
    %cst_31 = arith.constant 7.500000e-01 : f32
    %66 = vector.broadcast %cst_31 : f32 to vector<2x16x128xf32>
    %67 = arith.mulf %66, %65 : vector<2x16x128xf32>
    %68 = vector.extract_strided_slice %10 {offsets = [0, 3, 0, 0], sizes = [2, 1, 16, 128], strides = [1, 1, 1, 1]} : vector<2x4x16x128xf32> to vector<2x1x16x128xf32>
    %69 = vector.shape_cast %68 : vector<2x1x16x128xf32> to vector<2x16x128xf32>
    %cst_32 = arith.constant 2.500000e-01 : f32
    %70 = vector.broadcast %cst_32 : f32 to vector<2x16x128xf32>
    %71 = arith.mulf %70, %69 : vector<2x16x128xf32>
    %72 = arith.addf %67, %71 : vector<2x16x128xf32>
    %c0_33 = arith.constant 0 : index
    %c5 = arith.constant 5 : index
    %c0_34 = arith.constant 0 : index
    %c0_35 = arith.constant 0 : index
    %73 = vector.load %arg4[%c0_33, %c5, %c0_34, %c0_35] : memref<2x8x16x128xf32, #tpu.memory_space<vmem>>, vector<2x1x16x128xf32>
    %74 = vector.shape_cast %73 : vector<2x1x16x128xf32> to vector<2x16x128xf32>
    %75 = vector.shape_cast %72 : vector<2x16x128xf32> to vector<2x1x16x128xf32>
    tpu.vector_store %arg4[%c0_33, %c5, %c0_34, %c0_35], %75 {strides = array<i32>} : memref<2x8x16x128xf32, #tpu.memory_space<vmem>>, vector<2x1x16x128xf32>,
    %76 = vector.extract_strided_slice %10 {offsets = [0, 2, 0, 0], sizes = [2, 1, 16, 128], strides = [1, 1, 1, 1]} : vector<2x4x16x128xf32> to vector<2x1x16x128xf32>
    %77 = vector.shape_cast %76 : vector<2x1x16x128xf32> to vector<2x16x128xf32>
    %cst_36 = arith.constant 2.500000e-01 : f32
    %78 = vector.broadcast %cst_36 : f32 to vector<2x16x128xf32>
    %79 = arith.mulf %78, %77 : vector<2x16x128xf32>
    %80 = vector.extract_strided_slice %10 {offsets = [0, 3, 0, 0], sizes = [2, 1, 16, 128], strides = [1, 1, 1, 1]} : vector<2x4x16x128xf32> to vector<2x1x16x128xf32>
    %81 = vector.shape_cast %80 : vector<2x1x16x128xf32> to vector<2x16x128xf32>
    %cst_37 = arith.constant 7.500000e-01 : f32
    %82 = vector.broadcast %cst_37 : f32 to vector<2x16x128xf32>
    %83 = arith.mulf %82, %81 : vector<2x16x128xf32>
    %84 = arith.addf %79, %83 : vector<2x16x128xf32>
    %c0_38 = arith.constant 0 : index
    %c6 = arith.constant 6 : index
    %c0_39 = arith.constant 0 : index
    %c0_40 = arith.constant 0 : index
    %85 = vector.load %arg4[%c0_38, %c6, %c0_39, %c0_40] : memref<2x8x16x128xf32, #tpu.memory_space<vmem>>, vector<2x1x16x128xf32>
    %86 = vector.shape_cast %85 : vector<2x1x16x128xf32> to vector<2x16x128xf32>
    %87 = vector.shape_cast %84 : vector<2x16x128xf32> to vector<2x1x16x128xf32>
    tpu.vector_store %arg4[%c0_38, %c6, %c0_39, %c0_40], %87 {strides = array<i32>} : memref<2x8x16x128xf32, #tpu.memory_space<vmem>>, vector<2x1x16x128xf32>,
    %88 = vector.extract_strided_slice %10 {offsets = [0, 3, 0, 0], sizes = [2, 1, 16, 128], strides = [1, 1, 1, 1]} : vector<2x4x16x128xf32> to vector<2x1x16x128xf32>
    %89 = vector.shape_cast %88 : vector<2x1x16x128xf32> to vector<2x16x128xf32>
    %c0_41 = arith.constant 0 : index
    %c7 = arith.constant 7 : index
    %c0_42 = arith.constant 0 : index
    %c0_43 = arith.constant 0 : index
    %90 = vector.load %arg4[%c0_41, %c7, %c0_42, %c0_43] : memref<2x8x16x128xf32, #tpu.memory_space<vmem>>, vector<2x1x16x128xf32>
    %91 = vector.shape_cast %90 : vector<2x1x16x128xf32> to vector<2x16x128xf32>
    %92 = vector.shape_cast %89 : vector<2x16x128xf32> to vector<2x1x16x128xf32>
    tpu.vector_store %arg4[%c0_41, %c7, %c0_42, %c0_43], %92 {strides = array<i32>} : memref<2x8x16x128xf32, #tpu.memory_space<vmem>>, vector<2x1x16x128xf32>,
    return
  }
  func.func @transform_0(%arg0: i32) -> (i32, i32, i32) {
    %c0_i32 = arith.constant 0 : i32
    %c0_i32_0 = arith.constant 0 : i32
    %c0_i32_1 = arith.constant 0 : i32
    return %arg0, %c0_i32, %c0_i32_0 : i32, i32, i32
  }
  func.func @transform_1(%arg0: i32) -> (i32, i32) {
    %c0_i32 = arith.constant 0 : i32
    %c0_i32_0 = arith.constant 0 : i32
    %c0_i32_1 = arith.constant 0 : i32
    return %c0_i32, %c0_i32_0 : i32, i32
  }
  func.func @transform_2(%arg0: i32) -> (i32, i32) {
    %c0_i32 = arith.constant 0 : i32
    %c0_i32_0 = arith.constant 0 : i32
    %c0_i32_1 = arith.constant 0 : i32
    return %c0_i32, %c0_i32_0 : i32, i32
  }
  func.func @transform_3(%arg0: i32) -> (i32, i32, i32, i32) {
    %c0_i32 = arith.constant 0 : i32
    %c0_i32_0 = arith.constant 0 : i32
    %c0_i32_1 = arith.constant 0 : i32
    %c0_i32_2 = arith.constant 0 : i32
    return %arg0, %c0_i32, %c0_i32_0, %c0_i32_1 : i32, i32, i32, i32
  }
}

</mosaic_0001>

<bundles_post_ra>
// kernel: interpolate_trilinear.1
= control target key start
LH: loop header
LB: loop body
LE: loop exit
PB: predicated region body
PF: predicated region fallthrough
CT: control target
= control target key end

     0   :  { %s2183_s0 = inlined_call_operand.hbm [shape: f32[32,8,64], index: 0, kind: input, shape index: {}]   ;;  %s2184_s1 = inlined_call_operand.hbm [shape: f32[8,16], index: 1, kind: input, shape index: {}]   ;;  %s2185_s2 = inlined_call_operand.hbm [shape: f32[64,128], index: 2, kind: input, shape index: {}]   ;;  %s2186_s3 = inlined_call_operand.hbm [shape: f32[8,8,16,128], index: 3, kind: output, shape index: {}]  }
   0x1   :  { %2187 = sst [smem:[#allocation12_spill]] %s2184_s1 }
   0x2   :  { %2188 = sst [smem:[#allocation13_spill]] %s2185_s2 }
   0x3   :  { %8 = vsyncpa [#allocation3], 0 }
   0x4   :  { %10 = vsyncpa [#allocation3 + $0x1], 0 }
   0x5   :  { %11 = vsyncpa [#allocation6], 0 }
   0x6   :  { %12 = vsyncpa [#allocation4], 0 }
   0x7   :  { %14 = vsyncpa [#allocation4 + $0x1], 0  ;;  %s1866_s12 = smov 0   ;;  %s1868_s13 = smov 0  }
   0x8   :  { %s1870_s14 = smov 0   ;;  %s1872_s15 = smov 0  }
   0x9 LB: > { %s1887_s16 = sadd.s32 4294967295, %s1838_s15   ;;  %s1473_s17 = sadd.s32 4294967294, %s1838_s15   ;;  %s1838_s15 = sphi %s1872_s15, %s2200_s15   ;;  %s1834_s14 = sphi %s1870_s14, %s2199_s14   ;;  %s1830_s13 = sphi %s1868_s13, %s2198_s13   ;;  %s1826_s12 = sphi %s1866_s12, %s2197_s12  }
   0xa   : > { %s1891_s18 = sadd.s32 1, %s1838_s15   ;;  %s27_s19 = sadd.s32 1, %s1834_s14 }
   0xb   : > { %s24_s20 = ssub.s32 %s1838_s15, %s1891_s18  ;;  %p34_p0 = scmp.ne.s32.totalorder %s1834_s14, %s1830_s13 }
   0xc   : > { %p25_p1 = scmp.eq.s32.totalorder %s24_s20, 0  ;;  %p35_p2 = scmp.eq.s32.totalorder %s1838_s15, 0 }
   0xd   : > { %p40_p3 = scmp.ne.s32.totalorder %s1830_s13, %s1826_s12  ;;  %p41_p4 = scmp.eq.s32.totalorder %s1887_s16, 0 }
   0xe   : > { %s1903_s21 = scalar_select %p25_p1, %s1834_s14, %s27_s19  }
   0xf   : > { %p1905_p5 = por %p35_p2, %p34_p0  ;;  %p1911_p6 = por %p41_p4, %p40_p3 }
  0x10   : > { %p106_p7 = scmp.eq.s32.totalorder %s1887_s16, 3  ;;  %p112_p8 = scmp.eq.s32.totalorder %s1473_s17, 3 }
  0x11   : > { %p1474_p9 = scmp.ge.s32.totalorder %s1838_s15, 1  ;;  %p119_p10 = scmp.lt.s32.totalorder %s1838_s15, 5 }
  0x12   : > { %p1918_p11 = por %p106_p7, %p34_p0  ;;  %p1922_p12 = por %p112_p8, %p40_p3 }
  0x13   : > { %p1926_p13 = pnand %p1474_p9, %p119_p10  ;;  %s2194_s1 = sld [smem:[#allocation12_spill]] }
  0x14   : > { %s1840_s30 = smov [#allocation5]   ;;  %p1635_p2 = scmp.lt.s32.totalorder %s1838_s15, 4 }
  0x15   : > { %p1618_p1 = pneg %p1926_p13  ;;  %s133_s4 = sshll.u32 %s1840_s30, 4  ;;  %s134_s4 = int_to_ptr.vmem [resolvable:$true] %s133_s4 }
  0x16   : > { %s2195_s2 = sld [smem:[#allocation13_spill]]  ;;  %p1943_p3 = pnand %p1635_p2, %p1905_p5 }
  0x17   : > { %p1619_p0 = pnand %p1618_p1, %p41_p4  ;;  %s1841_s9 = smov [#allocation7]  }
  0x18   : > { %s144_s10 = sshll.u32 %s1841_s9, 4  ;;  %s158_s11 = sand.u32 1, %s1834_s14   ;;  %s145_s10 = int_to_ptr.vmem [resolvable:$true] %s144_s10 }
  0x19   : > { %s131_s29 = sshll.u32 %s2194_s1, 4  ;;  %s1842_s17 = smov 128   ;;  %s132_s29 = int_to_ptr.hbm [resolvable:$true] %s131_s29 }
  0x1a   : > { %1621 = dma.hbm_to_vmem [thread:$0]  (!%p1619_p0), %s132_s29, 128, %s134_s4, [#allocation6]  }
  0x1b   : > { %s1843_s19 = smov 8   ;;  %s1478_s20 = sshll.u32 %s158_s11, 6 }
  0x1c   : > { %s142_s7 = sshll.u32 %s2195_s2, 4  ;;  %s1600_s27 = sshll.u32 %s1838_s15, 6  ;;  %s143_s7 = int_to_ptr.hbm [resolvable:$true] %s142_s7 }
  0x1d   : > { %1624 = dma.hbm_to_vmem [thread:$0]  (!%p1619_p0), %s143_s7, 1024, %s145_s10, [#allocation6], %s1842_s17, %s1842_s17, %s1843_s19  }
  0x1e   : > { %s167_s5 = scalar_lea.hbm %s2183_s0, %s1600_s27  ;;  %s162_s29 = scalar_lea.vmem [#allocation2], %s1478_s20 }
  0x1f   : > { %s170_s22 = sshll.u32 %s162_s29, 4  ;;  %s168_s4 = sshll.u32 %s167_s5, 4  ;;  %s171_s22 = int_to_ptr.vmem [resolvable:$true] %s170_s22  ;;  %s169_s4 = int_to_ptr.hbm [resolvable:$true] %s168_s4 }
  0x20   : > { %s159_s6 = scalar_lea.sflag [#allocation3], %s158_s11  ;;  %s1738_s1 = sshra.s32 %s169_s4, 4  ;;  %s1739_s1 = int_to_ptr.hbm [resolvable:$true] %s1738_s1 }
  0x21   : > { %s1740_s9 = scalar_lea.hbm %s1739_s1, 64  ;;  %p1742_p7 = pneg %p1943_p3 }
  0x22   : > { %p1741_p5 = scmp.ne.s32.totalorder %s1739_s1, %s1740_s9  ;;  %s1745_s2 = scalar_lea.hbm %s2183_s0, 256 }
  0x23   : > { %p1746_p10 = scmp.lt.s32.totalorder %s1739_s1, %s2183_s0  ;;  %p1747_p1 = scmp.lt.s32.totalorder %s1745_s2, %s1740_s9 }
  0x24   : > { %p1743_p8 = pnand %p1742_p7, %p1741_p5 }
  0x25   : > { %p1748_p0 = por %p1747_p1, %p1746_p10 }
  0x26   : > { %p1744_p9 = pneg %p1743_p8 }
  0x28   : > { %p1749_p2 = pnand %p1748_p0, %p1744_p9 }
  0x2a   : > { %1752 = shalt.err (!%p1749_p2)
}
  0x2b   : > { %1628 = dma.hbm_to_vmem [thread:$0]  (!%p1943_p3), %s169_s4, 1024, %s171_s22, %s159_s6, %s1842_s17, %s1842_s17, %s1843_s19  }
  0x2c   : > { %182 = sbr.rel (%p1926_p13) target bundleno = 946 (0x3b2), region = 32  ;;  %s1965_s11 = sand.u32 (!%p1926_p13), 1, %s1830_s13  }
  0x2d   : > { %s1482_s20 = sshll.u32 (!%p1926_p13), %s1965_s11, 6  ;;  %s185_s30 = scalar_lea.sflag (!%p1926_p13), [#allocation3], %s1965_s11 }
  0x2e   : > { %s1969_s5 = scalar_lea.vmem (!%p1926_p13), [#allocation2], %s1482_s20 }
  0x31   : > { %1813 = dma.done.wait (%p1911_p6), %s185_s30, 1024  }
  0x32   : > { %1815 = vsyncadd (%p1911_p6), %s185_s30, 4294966272 }
  0x33   : > { %1817 = dma.done.wait (%p41_p4), [#allocation6], 1152  }
  0x34   : > { %1819 = vsyncadd (%p41_p4), [#allocation6], 4294966144  ;;  %v227_v0 = vld [vmem:[%s1969_s5 + $0x18] sm:$0xff]  ;;  %v224_v1 = vld [vmem:[%s1969_s5] sm:$0xff]  ;;  %vm489_vm0 = vcmask 64512   ;;  %vm1155_vm1 = vcmask 523264  }
  0x35   : > { %328 = vxpose.xlu1.b32.start.end [1/1] (short) (narrow) %v227_v0, 64  ;;  %232 = vxpose.xlu0.b32.start.end [1/1] (short) (narrow) %v224_v1, 64  ;;  %v229_v2 = vld [vmem:[%s1969_s5 + $0x28] sm:$0xff]  ;;  %v488_v3 = vld [vmem:[#allocation5] sm:$0xff]  ;;  %v226_v5 = vld [vmem:[%s1969_s5 + $0x10] sm:$0xff]  ;;  %s1485_s1 = sshll.u32 %s1965_s11, 8 }
  0x36   : > { %392 = vxpose.xlu2.b32.start.end [1/1] (short) (narrow) %v229_v2, 64  ;;  %697 = vmatpush.msra.mxu0 %v488_v3  ;;  %v225_v4 = vld [vmem:[%s1969_s5 + $0x8] sm:$0xff]  ;;  %v228_v8 = vld [vmem:[%s1969_s5 + $0x20] sm:$0xff]  ;;  %v230_v15 = vld [vmem:[%s1969_s5 + $0x30] sm:$0xff]  ;;  %s2110_s2 = scalar_lea.vmem [#allocation8], %s1485_s1  ;;  %s1602_s23 = sshll.u32 %s1887_s16, 8 }
  0x37   : > { %1603 = vmatpush.msra.mxu1 %v488_v3  ;;  %1604 = vmatpush.msra.mxu2 %v488_v3  ;;  %v231_v32 = vld [vmem:[%s1969_s5 + $0x38] sm:$0xff]  ;;  %s1377_s17 = scalar_lea.hbm %s2186_s3, %s1602_s23  ;;  %s1378_s19 = sshll.u32 %s2110_s2, 4  ;;  %s1379_s19 = int_to_ptr.vmem [resolvable:$true] %s1378_s19 }
  0x38   : > { %1605 = vmatpush.msra.mxu3 %v488_v3  ;;  %s1380_s29 = sshll.u32 %s1377_s17, 4  ;;  %s1365_s16 = scalar_lea.sflag [#allocation4], %s1965_s11  ;;  %s1381_s29 = int_to_ptr.hbm [resolvable:$true] %s1380_s29 }
  0x39   : > { %s1782_s22 = sshra.s32 %s1381_s29, 4  ;;  %s1788_s7 = scalar_lea.hbm %s2186_s3, 1024  ;;  %s1783_s22 = int_to_ptr.hbm [resolvable:$true] %s1782_s22 }
  0x3a   : > { %s1784_s4 = scalar_lea.hbm %s1783_s22, 256  ;;  %p1789_p3 = scmp.lt.s32.totalorder %s1783_s22, %s2186_s3 }
  0x3b   : > { %p1785_p4 = scmp.ne.s32.totalorder %s1783_s22, %s1784_s4  ;;  %p1790_p5 = scmp.lt.s32.totalorder %s1788_s7, %s1784_s4 }
  0x3d   : > { %p1786_p6 = pnand %p1785_p4, %p1918_p11  ;;  %p1791_p7 = por %p1790_p5, %p1789_p3 }
  0x3f   : > { %p1787_p13 = pneg %p1786_p6 }
  0x41   : > { %p1792_p8 = pnand %p1791_p7, %p1787_p13 }
  0x75   : > { %264 = vxpose.xlu1.b32.start.end [1/1] (short) (narrow) %v225_v4, 64  ;;  %296 = vxpose.xlu0.b32.start.end [1/1] (short) (narrow) %v226_v5, 64 }
  0x76   : > { %360 = vxpose.xlu2.b32.start.end [1/1] (short) (narrow) %v228_v8, 64 }
  0xb5   : > { %424 = vxpose.xlu0.b32.start.end [1/1] (short) (narrow) %v230_v15, 64  ;;  %456 = vxpose.xlu1.b32.start.end [1/1] (short) (narrow) %v231_v32, 64 }
  0xcf   : > { %v2015_v33 = vpop.trf.xlu2 }
  0xd7   : > { %v2018_v36 = vpop.trf.xlu2 }
  0xd9   : > { %v1984_v6 = vpop.trf.xlu1  ;;  %v248_v7 = vpop.trf.xlu0 }
  0xda   : > { %1486 = vmatmul.msk.f32.vlgmr.msra.gmra.mxu0 %vm489_vm0, %v248_v7 }
  0xdf   : > { %v2022_v39 = vpop.trf.xlu2 }
  0xe1   : > { %v1988_v9 = vpop.trf.xlu1  ;;  %v249_v10 = vpop.trf.xlu0 }
  0xe2   : > { %1487 = vmatmul.msk.f32.gmra.mxu0 %vm489_vm0, %v249_v10 }
  0xe7   : > { %v2026_v42 = vpop.trf.xlu2 }
  0xe9   : > { %v1991_v11 = vpop.trf.xlu1  ;;  %v250_v12 = vpop.trf.xlu0 }
  0xea   : > { %1488 = vmatmul.msk.f32.gmra.mxu0 %vm489_vm0, %v250_v12 }
  0xef   : > { %v412_v46 = vpop.trf.xlu2 }
  0xf0   : > { %1530 = vmatmul.msk.f32.vlgmr.msra.gmra.mxu3 %vm489_vm0, %v412_v46 }
  0xf1   : > { %v1994_v13 = vpop.trf.xlu1  ;;  %v251_v14 = vpop.trf.xlu0 }
  0xf2   : > { %1489 = vmatmul.msk.f32.gmra.mxu0 %vm489_vm0, %v251_v14 }
  0xf7   : > { %v413_v48 = vpop.trf.xlu2 }
  0xf8   : > { %1531 = vmatmul.msk.f32.gmra.mxu3 %vm489_vm0, %v413_v48 }
  0xf9   : > { %v1998_v16 = vpop.trf.xlu1  ;;  %v252_v17 = vpop.trf.xlu0 }
  0xfa   : > { %1490 = vmatmul.msk.f32.gmra.mxu0 %vm489_vm0, %v252_v17 }
  0xff   : > { %v414_v50 = vpop.trf.xlu2 }
 0x100   : > { %1532 = vmatmul.msk.f32.gmra.mxu3 %vm489_vm0, %v414_v50 }
 0x101   : > { %v2001_v18 = vpop.trf.xlu1  ;;  %v253_v19 = vpop.trf.xlu0 }
 0x102   : > { %1491 = vmatmul.msk.f32.gmra.mxu0 %vm489_vm0, %v253_v19 }
 0x107   : > { %v415_v52 = vpop.trf.xlu2 }
 0x108   : > { %1533 = vmatmul.msk.f32.gmra.mxu3 %vm489_vm0, %v415_v52 }
 0x109   : > { %v2004_v20 = vpop.trf.xlu1  ;;  %v254_v21 = vpop.trf.xlu0 }
 0x10a   : > { %1492 = vmatmul.msk.f32.gmra.mxu0 %vm489_vm0, %v254_v21 }
 0x10f   : > { %v376_v56 = vpop.trf.xlu2 }
 0x111   : > { %v2007_v22 = vpop.trf.xlu1  ;;  %v255_v23 = vpop.trf.xlu0 }
 0x112   : > { %1493 = vmatmul.msk.f32.gmra.mxu0 %vm489_vm0, %v255_v23 }
 0x117   : > { %v377_v58 = vpop.trf.xlu2 }
 0x119   : > { %v280_v24 = vpop.trf.xlu1  ;;  %v312_v25 = vpop.trf.xlu0 }
 0x11a   : > { %1494 = vmatmul.msk.f32.gmra.mxu0 %vm489_vm0, %v280_v24 }
 0x11f   : > { %v378_v61 = vpop.trf.xlu2 }
 0x121   : > { %v281_v26 = vpop.trf.xlu1  ;;  %v313_v27 = vpop.trf.xlu0 }
 0x122   : > { %1495 = vmatmul.msk.f32.gmra.mxu0 %vm489_vm0, %v281_v26 }
 0x127   : > { %v379_v0 = vpop.trf.xlu2 }
 0x129   : > { %v282_v28 = vpop.trf.xlu1  ;;  %v314_v29 = vpop.trf.xlu0 }
 0x12a   : > { %1496 = vmatmul.msk.f32.gmra.mxu0 %vm489_vm0, %v282_v28 }
 0x12f   : > { %v380_v5 = vpop.trf.xlu2 }
 0x131   : > { %v283_v30 = vpop.trf.xlu1  ;;  %v315_v31 = vpop.trf.xlu0 }
 0x132   : > { %1497 = vmatmul.msk.f32.gmra.mxu0 %vm489_vm0, %v283_v30 }
 0x137   : > { %v381_v8 = vpop.trf.xlu2 }
 0x139   : > { %v284_v34 = vpop.trf.xlu1  ;;  %v316_v35 = vpop.trf.xlu0 }
 0x13a   : > { %1498 = vmatmul.msk.f32.gmra.mxu0 %vm489_vm0, %v284_v34 }
 0x141   : > { %v285_v37 = vpop.trf.xlu1  ;;  %v317_v38 = vpop.trf.xlu0 }
 0x142   : > { %1499 = vmatmul.msk.f32.gmra.mxu0 %vm489_vm0, %v285_v37  ;;  %1507 = vmatmul.msk.f32.vlgmr.msra.gmra.mxu1 %vm489_vm0, %v317_v38 }
 0x149   : > { %v286_v40 = vpop.trf.xlu1  ;;  %v318_v41 = vpop.trf.xlu0 }
 0x14a   : > { %1500 = vmatmul.msk.f32.gmra.mxu0 %vm489_vm0, %v286_v40  ;;  %1508 = vmatmul.msk.f32.gmra.mxu1 %vm489_vm0, %v318_v41 }
 0x151   : > { %v287_v43 = vpop.trf.xlu1  ;;  %v319_v44 = vpop.trf.xlu0 }
 0x152   : > { %1501 = vmatmul.msk.f32.gmra.mxu0 %vm489_vm0, %v287_v43  ;;  %1509 = vmatmul.msk.f32.vlgmr.msra.gmra.mxu2 %vm489_vm0, %v319_v44 }
 0x157   : > { %v699_v45 = vpop.f32.mrf.mxu0 }
 0x158   : > { %891 = vxpose.xlu2.b32.start [1/8] (short) (narrow) %v699_v45, 16 }
 0x159   : > { %v440_v60 = vpop.trf.xlu0  ;;  %v472_v19 = vpop.trf.xlu1 }
 0x15a   : > { %1502 = vmatmul.msk.f32.gmra.mxu0 %vm489_vm0, %v312_v25  ;;  %1510 = vmatmul.msk.f32.gmra.mxu2 %vm489_vm0, %v1984_v6 }
 0x15b   : > { %1534 = vmatmul.msk.f32.gmra.mxu3 %vm489_vm0, %v440_v60 }
 0x15f   : > { %v702_v47 = vpop.f32.mrf.mxu0 }
 0x160   : > { %892 = vxpose.xlu2.b32.cont [2/8] (short) (narrow) %v702_v47, 16 }
 0x161   : > { %v441_v63 = vpop.trf.xlu0 }
 0x162   : > { %1503 = vmatmul.msk.f32.gmra.mxu0 %vm489_vm0, %v313_v27  ;;  %1511 = vmatmul.msk.f32.gmra.mxu2 %vm489_vm0, %v1988_v9 }
 0x163   : > { %1535 = vmatmul.msk.f32.gmra.mxu3 %vm489_vm0, %v441_v63 }
 0x167   : > { %v705_v49 = vpop.f32.mrf.mxu0 }
 0x168   : > { %893 = vxpose.xlu2.b32.cont [3/8] (short) (narrow) %v705_v49, 16 }
 0x169   : > { %v442_v2 = vpop.trf.xlu0 }
 0x16a   : > { %1504 = vmatmul.msk.f32.gmra.mxu0 %vm489_vm0, %v314_v29  ;;  %1512 = vmatmul.msk.f32.gmra.mxu2 %vm489_vm0, %v1991_v11  ;;  %v382_v11 = vpop.trf.xlu2 }
 0x16b   : > { %1536 = vmatmul.msk.f32.gmra.mxu3 %vm489_vm0, %v442_v2 }
 0x16f   : > { %v708_v51 = vpop.f32.mrf.mxu0 }
 0x170   : > { %894 = vxpose.xlu2.b32.cont [4/8] (short) (narrow) %v708_v51, 16 }
 0x171   : > { %v443_v4 = vpop.trf.xlu0 }
 0x172   : > { %1505 = vmatmul.msk.f32.gmra.mxu0 %vm489_vm0, %v315_v31  ;;  %1513 = vmatmul.msk.f32.gmra.mxu2 %vm489_vm0, %v1994_v13  ;;  %v383_v15 = vpop.trf.xlu2 }
 0x173   : > { %1537 = vmatmul.msk.f32.gmra.mxu3 %vm489_vm0, %v443_v4  ;;  %v2083_v31 = vpop.f32.mrf.mxu3  ;;  %v1153_v4 = vld [vmem:[#allocation7 + $0x30] sm:$0xff] }
 0x177   : > { %v711_v53 = vpop.f32.mrf.mxu0 }
 0x178   : > { %895 = vxpose.xlu2.b32.cont [5/8] (short) (narrow) %v711_v53, 16 }
 0x179   : > { %v444_v7 = vpop.trf.xlu0 }
 0x17a   : > { %1506 = vmatmul.msk.f32.gmra.mxu0 %vm489_vm0, %v316_v35  ;;  %1514 = vmatmul.msk.f32.gmra.mxu2 %vm489_vm0, %v1998_v16 }
 0x17b   : > { %1538 = vmatmul.msk.f32.gmra.mxu3 %vm489_vm0, %v444_v7  ;;  %v1152_v7 = vld [vmem:[#allocation7 + $0x28] sm:$0xff] }
 0x17f   : > { %v714_v54 = vpop.f32.mrf.mxu0 }
 0x180   : > { %896 = vxpose.xlu2.b32.cont [6/8] (short) (narrow) %v714_v54, 16 }
 0x181   : > { %v445_v10 = vpop.trf.xlu0 }
 0x182   : > { %1515 = vmatmul.msk.f32.gmra.mxu2 %vm489_vm0, %v2001_v18 }
 0x183   : > { %1539 = vmatmul.msk.f32.gmra.mxu3 %vm489_vm0, %v445_v10  ;;  %v1149_v10 = vld [vmem:[#allocation7 + $0x10] sm:$0xff] }
 0x187   : > { %v717_v55 = vpop.f32.mrf.mxu0 }
 0x188   : > { %897 = vxpose.xlu2.b32.cont [7/8] (short) (narrow) %v717_v55, 16 }
 0x189   : > { %v446_v13 = vpop.trf.xlu0 }
 0x18a   : > { %1516 = vmatmul.msk.f32.gmra.mxu2 %vm489_vm0, %v2004_v20 }
 0x18b   : > { %1540 = vmatmul.msk.f32.gmra.mxu3 %vm489_vm0, %v446_v13 }
 0x18f   : > { %v720_v57 = vpop.f32.mrf.mxu0 }
 0x190   : > { %898 = vxpose.xlu2.b32.end [8/8] (short) (narrow) %v720_v57, 16 }
 0x191   : > { %v447_v16 = vpop.trf.xlu0 }
 0x192   : > { %1517 = vmatmul.msk.f32.gmra.mxu2 %vm489_vm0, %v2007_v22  ;;  %v473_v22 = vpop.trf.xlu1 }
 0x193   : > { %1541 = vmatmul.msk.f32.gmra.mxu3 %vm489_vm0, %v447_v16 }
 0x197   : > { %v723_v59 = vpop.f32.mrf.mxu0 }
 0x198   : > { %923 = vxpose.xlu0.b32.start [1/8] (short) (narrow) %v723_v59, 16 }
 0x19a   : > { %1518 = vmatmul.msk.f32.gmra.mxu2 %vm489_vm0, %v376_v56  ;;  %v474_v25 = vpop.trf.xlu1 }
 0x19b   : > { %1542 = vmatmul.msk.f32.gmra.mxu3 %vm489_vm0, %v472_v19 }
 0x19f   : > { %v726_v62 = vpop.f32.mrf.mxu0 }
 0x1a0   : > { %924 = vxpose.xlu0.b32.cont [2/8] (short) (narrow) %v726_v62, 16 }
 0x1a2   : > { %1519 = vmatmul.msk.f32.gmra.mxu2 %vm489_vm0, %v377_v58  ;;  %v475_v28 = vpop.trf.xlu1 }
 0x1a3   : > { %1543 = vmatmul.msk.f32.gmra.mxu3 %vm489_vm0, %v473_v22 }
 0x1a7   : > { %v729_v1 = vpop.f32.mrf.mxu0 }
 0x1a8   : > { %925 = vxpose.xlu0.b32.cont [3/8] (short) (narrow) %v729_v1, 16 }
 0x1aa   : > { %1520 = vmatmul.msk.f32.gmra.mxu2 %vm489_vm0, %v378_v61  ;;  %v476_v32 = vpop.trf.xlu1 }
 0x1ab   : > { %1544 = vmatmul.msk.f32.gmra.mxu3 %vm489_vm0, %v474_v25 }
 0x1af   : > { %v732_v3 = vpop.f32.mrf.mxu0 }
 0x1b0   : > { %926 = vxpose.xlu0.b32.cont [4/8] (short) (narrow) %v732_v3, 16  ;;  %v1154_v3 = vld [vmem:[#allocation7 + $0x38] sm:$0xff] }
 0x1b1   : > { %1212 = vmatpush.msrb.mxu1 %v1154_v3 }
 0x1b2   : > { %1521 = vmatmul.msk.f32.gmra.mxu2 %vm489_vm0, %v379_v0  ;;  %v477_v35 = vpop.trf.xlu1 }
 0x1b3   : > { %1545 = vmatmul.msk.f32.gmra.mxu3 %vm489_vm0, %v475_v28  ;;  %1213 = vmatpush.msrb.mxu1 %v1153_v4 }
 0x1b5   : > { %1214 = vmatpush.msrb.mxu1 %v1152_v7 }
 0x1b7   : > { %v735_v6 = vpop.f32.mrf.mxu0 }
 0x1b8   : > { %927 = vxpose.xlu0.b32.cont [5/8] (short) (narrow) %v735_v6, 16 }
 0x1ba   : > { %1522 = vmatmul.msk.f32.gmra.mxu2 %vm489_vm0, %v380_v5 }
 0x1bb   : > { %1546 = vmatmul.msk.f32.gmra.mxu3 %vm489_vm0, %v476_v32 }
 0x1bf   : > { %v738_v9 = vpop.f32.mrf.mxu0 }
 0x1c0   : > { %928 = vxpose.xlu0.b32.cont [6/8] (short) (narrow) %v738_v9, 16  ;;  %v1150_v9 = vld [vmem:[#allocation7 + $0x18] sm:$0xff] }
 0x1c2   : > { %1523 = vmatmul.msk.f32.gmra.mxu2 %vm489_vm0, %v381_v8  ;;  %v1151_v8 = vld [vmem:[#allocation7 + $0x20] sm:$0xff] }
 0x1c3   : > { %1547 = vmatmul.msk.f32.gmra.mxu3 %vm489_vm0, %v477_v35  ;;  %1215 = vmatpush.msrb.mxu1 %v1151_v8 }
 0x1c5   : > { %1216 = vmatpush.msrb.mxu1 %v1150_v9 }
 0x1c7   : > { %v741_v12 = vpop.f32.mrf.mxu0  ;;  %1217 = vmatpush.msrb.mxu1 %v1149_v10 }
 0x1c8   : > { %929 = vxpose.xlu0.b32.cont [7/8] (short) (narrow) %v741_v12, 16 }
 0x1ca   : > { %1524 = vmatmul.msk.f32.gmra.mxu2 %vm489_vm0, %v382_v11  ;;  %v1148_v11 = vld [vmem:[#allocation7 + $0x8] sm:$0xff] }
 0x1cb   : > { %1218 = vmatpush.msrb.mxu1 %v1148_v11 }
 0x1cf   : > { %v744_v14 = vpop.f32.mrf.mxu0 }
 0x1d0   : > { %930 = vxpose.xlu0.b32.end [8/8] (short) (narrow) %v744_v14, 16  ;;  %v1147_v14 = vld [vmem:[#allocation7] sm:$0xff] }
 0x1d1   : > { %1219 = vmatpush.msrb.mxu1 %v1147_v14 }
 0x1d2   : > { %1525 = vmatmul.msk.f32.gmra.mxu2 %vm489_vm0, %v383_v15 }
 0x1d5   : > { %v768_v17 = vpop.f32.mrf.mxu2 }
 0x1d7   : > { %v747_v18 = vpop.f32.mrf.mxu0 }
 0x1d8   : > { %955 = vxpose.xlu1.b32.start [1/8] (short) (narrow) %v747_v18, 16 }
 0x1da   : > { %1526 = vmatmul.msk.f32.gmra.mxu2 %vm489_vm0, %v2015_v33  ;;  %v762_v33 = vpop.f32.mrf.mxu1 }
 0x1dd   : > { %v771_v20 = vpop.f32.mrf.mxu2 }
 0x1de   : > { %987 = vxpose.xlu2.b32.start [1/8] (short) (narrow) %v771_v20, 16 }
 0x1df   : > { %v750_v21 = vpop.f32.mrf.mxu0 }
 0x1e0   : > { %956 = vxpose.xlu1.b32.cont [2/8] (short) (narrow) %v750_v21, 16 }
 0x1e2   : > { %1527 = vmatmul.msk.f32.gmra.mxu2 %vm489_vm0, %v2018_v36  ;;  %v2086_v36 = vpop.f32.mrf.mxu3  ;;  %v765_v38 = vpop.f32.mrf.mxu1 }
 0x1e5   : > { %v774_v23 = vpop.f32.mrf.mxu2 }
 0x1e6   : > { %988 = vxpose.xlu2.b32.cont [2/8] (short) (narrow) %v774_v23, 16 }
 0x1e7   : > { %v753_v24 = vpop.f32.mrf.mxu0 }
 0x1e8   : > { %957 = vxpose.xlu1.b32.cont [3/8] (short) (narrow) %v753_v24, 16 }
 0x1ea   : > { %1528 = vmatmul.msk.f32.gmra.mxu2 %vm489_vm0, %v2022_v39  ;;  %v478_v39 = vpop.trf.xlu1  ;;  %v2090_v40 = vpop.f32.mrf.mxu3 }
 0x1eb   : > { %1548 = vmatmul.msk.f32.gmra.mxu3 %vm489_vm0, %v478_v39 }
 0x1ed   : > { %v777_v26 = vpop.f32.mrf.mxu2 }
 0x1ee   : > { %989 = vxpose.xlu2.b32.cont [3/8] (short) (narrow) %v777_v26, 16 }
 0x1ef   : > { %v756_v27 = vpop.f32.mrf.mxu0 }
 0x1f0   : > { %958 = vxpose.xlu1.b32.cont [4/8] (short) (narrow) %v756_v27, 16 }
 0x1f1   : > { %v907_v13 = vpop.trf.xlu2 }
 0x1f2   : > { %1529 = vmatmul.msk.f32.gmra.mxu2 %vm489_vm0, %v2026_v42  ;;  %v479_v42 = vpop.trf.xlu1  ;;  %v2093_v44 = vpop.f32.mrf.mxu3  ;;  %1550 = vmatmul.msk.f32.vlgmr.msrb.gmra.mxu1 %vm1155_vm1, %v907_v13 }
 0x1f3   : > { %1549 = vmatmul.msk.f32.gmra.mxu3 %vm489_vm0, %v479_v42 }
 0x1f5   : > { %v780_v29 = vpop.f32.mrf.mxu2 }
 0x1f6   : > { %990 = vxpose.xlu2.b32.cont [4/8] (short) (narrow) %v780_v29, 16 }
 0x1f7   : > { %v759_v30 = vpop.f32.mrf.mxu0 }
 0x1f8   : > { %959 = vxpose.xlu1.b32.cont [5/8] (short) (narrow) %v759_v30, 16 }
 0x1f9   : > { %v908_v16 = vpop.trf.xlu2 }
 0x1fa   : > { %v843_v46 = vpop.f32.mrf.mxu3  ;;  %1551 = vmatmul.msk.f32.gmra.mxu1 %vm1155_vm1, %v908_v16 }
 0x1fd   : > { %v783_v34 = vpop.f32.mrf.mxu2 }
 0x1fe   : > { %991 = vxpose.xlu2.b32.cont [5/8] (short) (narrow) %v783_v34, 16 }
 0x200   : > { %960 = vxpose.xlu1.b32.cont [6/8] (short) (narrow) %v762_v33, 16 }
 0x202   : > { %v846_v48 = vpop.f32.mrf.mxu3 }
 0x205   : > { %v786_v37 = vpop.f32.mrf.mxu2 }
 0x206   : > { %992 = vxpose.xlu2.b32.cont [6/8] (short) (narrow) %v786_v37, 16 }
 0x208   : > { %961 = vxpose.xlu1.b32.cont [7/8] (short) (narrow) %v765_v38, 16 }
 0x20a   : > { %v849_v50 = vpop.f32.mrf.mxu3 }
 0x20d   : > { %v789_v41 = vpop.f32.mrf.mxu2 }
 0x20e   : > { %993 = vxpose.xlu2.b32.cont [7/8] (short) (narrow) %v789_v41, 16 }
 0x210   : > { %962 = vxpose.xlu1.b32.end [8/8] (short) (narrow) %v768_v17, 16 }
 0x212   : > { %v852_v52 = vpop.f32.mrf.mxu3 }
 0x215   : > { %v792_v43 = vpop.f32.mrf.mxu2 }
 0x216   : > { %994 = vxpose.xlu2.b32.end [8/8] (short) (narrow) %v792_v43, 16 }
 0x21a   : > { %v855_v54 = vpop.f32.mrf.mxu3 }
 0x21d   : > { %v795_v45 = vpop.f32.mrf.mxu2 }
 0x21e   : > { %1019 = vxpose.xlu0.b32.start [1/8] (short) (narrow) %v795_v45, 16  ;;  %1083 = vxpose.xlu2.b32.start [1/8] (short) (narrow) %v843_v46, 16 }
 0x222   : > { %v858_v56 = vpop.f32.mrf.mxu3 }
 0x225   : > { %v798_v47 = vpop.f32.mrf.mxu2 }
 0x226   : > { %1020 = vxpose.xlu0.b32.cont [2/8] (short) (narrow) %v798_v47, 16  ;;  %1084 = vxpose.xlu2.b32.cont [2/8] (short) (narrow) %v846_v48, 16 }
 0x22a   : > { %v861_v58 = vpop.f32.mrf.mxu3 }
 0x22d   : > { %v801_v49 = vpop.f32.mrf.mxu2 }
 0x22e   : > { %1021 = vxpose.xlu0.b32.cont [3/8] (short) (narrow) %v801_v49, 16  ;;  %1085 = vxpose.xlu2.b32.cont [3/8] (short) (narrow) %v849_v50, 16 }
 0x232   : > { %v864_v60 = vpop.f32.mrf.mxu3 }
 0x235   : > { %v804_v51 = vpop.f32.mrf.mxu2 }
 0x236   : > { %1022 = vxpose.xlu0.b32.cont [4/8] (short) (narrow) %v804_v51, 16  ;;  %1086 = vxpose.xlu2.b32.cont [4/8] (short) (narrow) %v852_v52, 16 }
 0x23a   : > { %v867_v62 = vpop.f32.mrf.mxu3 }
 0x23c   : > { %v939_v18 = vpop.trf.xlu0 }
 0x23d   : > { %v807_v53 = vpop.f32.mrf.mxu2  ;;  %1552 = vmatmul.msk.f32.gmra.mxu1 %vm1155_vm1, %v939_v18 }
 0x23e   : > { %1023 = vxpose.xlu0.b32.cont [5/8] (short) (narrow) %v807_v53, 16  ;;  %1087 = vxpose.xlu2.b32.cont [5/8] (short) (narrow) %v855_v54, 16 }
 0x242   : > { %v870_v0 = vpop.f32.mrf.mxu3 }
 0x244   : > { %v940_v20 = vpop.trf.xlu0 }
 0x245   : > { %v810_v55 = vpop.f32.mrf.mxu2  ;;  %1553 = vmatmul.msk.f32.gmra.mxu1 %vm1155_vm1, %v940_v20 }
 0x246   : > { %1024 = vxpose.xlu0.b32.cont [6/8] (short) (narrow) %v810_v55, 16  ;;  %1088 = vxpose.xlu2.b32.cont [6/8] (short) (narrow) %v858_v56, 16 }
 0x24a   : > { %v873_v2 = vpop.f32.mrf.mxu3 }
 0x24d   : > { %v813_v57 = vpop.f32.mrf.mxu2 }
 0x24e   : > { %1025 = vxpose.xlu0.b32.cont [7/8] (short) (narrow) %v813_v57, 16  ;;  %1089 = vxpose.xlu2.b32.cont [7/8] (short) (narrow) %v861_v58, 16 }
 0x252   : > { %v876_v6 = vpop.f32.mrf.mxu3 }
 0x255   : > { %v816_v59 = vpop.f32.mrf.mxu2 }
 0x256   : > { %1026 = vxpose.xlu0.b32.end [8/8] (short) (narrow) %v816_v59, 16  ;;  %1090 = vxpose.xlu2.b32.end [8/8] (short) (narrow) %v864_v60, 16 }
 0x25a   : > { %v879_v12 = vpop.f32.mrf.mxu3 }
 0x25d   : > { %v819_v61 = vpop.f32.mrf.mxu2 }
 0x25e   : > { %1051 = vxpose.xlu1.b32.start [1/8] (short) (narrow) %v819_v61, 16  ;;  %1115 = vxpose.xlu0.b32.start [1/8] (short) (narrow) %v867_v62, 16 }
 0x262   : > { %v882_v15 = vpop.f32.mrf.mxu3 }
 0x265   : > { %v822_v63 = vpop.f32.mrf.mxu2 }
 0x266   : > { %1052 = vxpose.xlu1.b32.cont [2/8] (short) (narrow) %v822_v63, 16  ;;  %1116 = vxpose.xlu0.b32.cont [2/8] (short) (narrow) %v870_v0, 16 }
 0x26d   : > { %v825_v1 = vpop.f32.mrf.mxu2 }
 0x26e   : > { %1053 = vxpose.xlu1.b32.cont [3/8] (short) (narrow) %v825_v1, 16  ;;  %1117 = vxpose.xlu0.b32.cont [3/8] (short) (narrow) %v873_v2, 16  ;;  %v885_v17 = vpop.f32.mrf.mxu3 }
 0x26f   : > { %v1221_v27 = vpop.f32.mrf.mxu1 }
 0x270   : > { %1269 = vst [vmem:[%s2110_s2] sm:$0xff] %v1221_v27  ;;  %v1273_v32 = vmul.f32 0.75, %v1221_v27  ;;  %v1290_v33 = vmul.f32 0.25, %v1221_v27 }
 0x275   : > { %v828_v5 = vpop.f32.mrf.mxu2 }
 0x276   : > { %1054 = vxpose.xlu1.b32.cont [4/8] (short) (narrow) %v828_v5, 16  ;;  %1118 = vxpose.xlu0.b32.cont [4/8] (short) (narrow) %v876_v6, 16  ;;  %v888_v19 = vpop.f32.mrf.mxu3 }
 0x277   : > { %v1003_v23 = vpop.trf.xlu2  ;;  %v1224_v29 = vpop.f32.mrf.mxu1 }
 0x278   : > { %1270 = vst [vmem:[%s2110_s2 + $0x8] sm:$0xff] %v1224_v29  ;;  %v1274_v39 = vmul.f32 0.75, %v1224_v29 }
 0x27c   : > { %v971_v21 = vpop.trf.xlu1 }
 0x27d   : > { %1554 = vmatmul.msk.f32.gmra.mxu1 %vm1155_vm1, %v971_v21 }
 0x27e   : > { %1055 = vxpose.xlu1.b32.cont [5/8] (short) (narrow) %v2083_v31, 16  ;;  %1119 = vxpose.xlu0.b32.cont [5/8] (short) (narrow) %v879_v12, 16 }
 0x27f   : > { %v1004_v24 = vpop.trf.xlu2 }
 0x284   : > { %v972_v22 = vpop.trf.xlu1 }
 0x285   : > { %1555 = vmatmul.msk.f32.gmra.mxu1 %vm1155_vm1, %v972_v22 }
 0x286   : > { %1056 = vxpose.xlu1.b32.cont [6/8] (short) (narrow) %v2086_v36, 16  ;;  %1120 = vxpose.xlu0.b32.cont [6/8] (short) (narrow) %v882_v15, 16 }
 0x28d   : > { %1556 = vmatmul.msk.f32.gmra.mxu1 %vm1155_vm1, %v1003_v23 }
 0x28e   : > { %1057 = vxpose.xlu1.b32.cont [7/8] (short) (narrow) %v2090_v40, 16  ;;  %1121 = vxpose.xlu0.b32.cont [7/8] (short) (narrow) %v885_v17, 16  ;;  %v1291_v40 = vmul.f32 0.25, %v1224_v29 }
 0x295   : > { %1557 = vmatmul.msk.f32.gmra.mxu1 %vm1155_vm1, %v1004_v24 }
 0x296   : > { %1058 = vxpose.xlu1.b32.end [8/8] (short) (narrow) %v2093_v44, 16  ;;  %1122 = vxpose.xlu0.b32.end [8/8] (short) (narrow) %v888_v19, 16 }
 0x2b7   : > { %v1099_v31 = vpop.trf.xlu2 }
 0x2ba   : > { %v1227_v34 = vpop.f32.mrf.mxu1 }
 0x2bb   : > { %v1277_v35 = vmul.f32 0.25, %v1227_v34  ;;  %v1294_v36 = vmul.f32 0.75, %v1227_v34 }
 0x2bd   : > { %v1281_v37 = vadd.f32 %v1277_v35, %v1273_v32  ;;  %v1298_v38 = vadd.f32 %v1294_v36, %v1290_v33 }
 0x2bf   : > { %1566 = vst [vmem:[%s2110_s2 + $0x10] sm:$0xff] %v1281_v37  ;;  %v1100_v42 = vpop.trf.xlu2 }
 0x2c0   : > { %1570 = vst [vmem:[%s2110_s2 + $0x20] sm:$0xff] %v1298_v38 }
 0x2c2   : > { %v1035_v25 = vpop.trf.xlu0  ;;  %v1230_v41 = vpop.f32.mrf.mxu1 }
 0x2c3   : > { %1558 = vmatmul.msk.f32.gmra.mxu1 %vm1155_vm1, %v1035_v25  ;;  %v1278_v43 = vmul.f32 0.25, %v1230_v41  ;;  %v1295_v44 = vmul.f32 0.75, %v1230_v41 }
 0x2c5   : > { %v1282_v45 = vadd.f32 %v1278_v43, %v1274_v39  ;;  %v1299_v46 = vadd.f32 %v1295_v44, %v1291_v40 }
 0x2c7   : > { %1567 = vst [vmem:[%s2110_s2 + $0x18] sm:$0xff] %v1282_v45 }
 0x2c8   : > { %1571 = vst [vmem:[%s2110_s2 + $0x28] sm:$0xff] %v1299_v46 }
 0x2ca   : > { %v1036_v26 = vpop.trf.xlu0 }
 0x2cb   : > { %1559 = vmatmul.msk.f32.gmra.mxu1 %vm1155_vm1, %v1036_v26 }
 0x2fa   : > { %v1233_v48 = vpop.f32.mrf.mxu1 }
 0x2fb   : > { %v1307_v49 = vmul.f32 0.25, %v1233_v48  ;;  %v1320_v50 = vmul.f32 0.75, %v1233_v48 }
 0x2fd   : > { %v1311_v51 = vadd.f32 %v1307_v49, %v1294_v36  ;;  %v1324_v52 = vadd.f32 %v1320_v50, %v1277_v35 }
 0x2ff   : > { %1574 = vst [vmem:[%s2110_s2 + $0x30] sm:$0xff] %v1311_v51 }
 0x300   : > { %1578 = vst [vmem:[%s2110_s2 + $0x40] sm:$0xff] %v1324_v52 }
 0x302   : > { %v1067_v28 = vpop.trf.xlu1  ;;  %v1131_v47 = vpop.trf.xlu0 }
 0x303   : > { %1560 = vmatmul.msk.f32.gmra.mxu1 %vm1155_vm1, %v1067_v28  ;;  %v1236_v53 = vpop.f32.mrf.mxu1 }
 0x304   : > { %v1308_v55 = vmul.f32 0.25, %v1236_v53  ;;  %v1321_v56 = vmul.f32 0.75, %v1236_v53 }
 0x306   : > { %v1312_v57 = vadd.f32 %v1308_v55, %v1295_v44  ;;  %v1325_v58 = vadd.f32 %v1321_v56, %v1278_v43 }
 0x308   : > { %1575 = vst [vmem:[%s2110_s2 + $0x38] sm:$0xff] %v1312_v57 }
 0x309   : > { %1579 = vst [vmem:[%s2110_s2 + $0x48] sm:$0xff] %v1325_v58 }
 0x30a   : > { %v1068_v30 = vpop.trf.xlu1  ;;  %v1132_v54 = vpop.trf.xlu0 }
 0x30b   : > { %1561 = vmatmul.msk.f32.gmra.mxu1 %vm1155_vm1, %v1068_v30  ;;  %v1239_v59 = vpop.f32.mrf.mxu1 }
 0x30c   : > { %v1333_v60 = vmul.f32 0.25, %v1239_v59  ;;  %v1346_v61 = vmul.f32 0.75, %v1239_v59  ;;  %1590 = vst [vmem:[%s2110_s2 + $0x70] sm:$0xff] %v1239_v59 }
 0x30e   : > { %v1337_v62 = vadd.f32 %v1333_v60, %v1320_v50  ;;  %v1350_v63 = vadd.f32 %v1346_v61, %v1307_v49 }
 0x310   : > { %1582 = vst [vmem:[%s2110_s2 + $0x50] sm:$0xff] %v1337_v62 }
 0x311   : > { %1586 = vst [vmem:[%s2110_s2 + $0x60] sm:$0xff] %v1350_v63 }
 0x313   : > { %1562 = vmatmul.msk.f32.gmra.mxu1 %vm1155_vm1, %v1099_v31  ;;  %v1242_v0 = vpop.f32.mrf.mxu1 }
 0x314   : > { %v1334_v1 = vmul.f32 0.25, %v1242_v0  ;;  %v1347_v2 = vmul.f32 0.75, %v1242_v0  ;;  %1591 = vst [vmem:[%s2110_s2 + $0x78] sm:$0xff] %v1242_v0 }
 0x316   : > { %v1338_v3 = vadd.f32 %v1334_v1, %v1321_v56  ;;  %v1351_v4 = vadd.f32 %v1347_v2, %v1308_v55 }
 0x318   : > { %1583 = vst [vmem:[%s2110_s2 + $0x58] sm:$0xff] %v1338_v3 }
 0x319   : > { %1587 = vst [vmem:[%s2110_s2 + $0x68] sm:$0xff] %v1351_v4 }
 0x31b   : > { %1563 = vmatmul.msk.f32.gmra.mxu1 %vm1155_vm1, %v1100_v42 }
 0x323   : > { %1564 = vmatmul.msk.f32.gmra.mxu1 %vm1155_vm1, %v1131_v47 }
 0x32b   : > { %1565 = vmatmul.msk.f32.gmra.mxu1 %vm1155_vm1, %v1132_v54 }
 0x340   : > { %v1245_v5 = vpop.f32.mrf.mxu1 }
 0x341   : > { %1271 = vst [vmem:[%s2110_s2 + $0x80] sm:$0xff] %v1245_v5  ;;  %v1275_v8 = vmul.f32 0.75, %v1245_v5  ;;  %v1292_v9 = vmul.f32 0.25, %v1245_v5 }
 0x348   : > { %v1248_v6 = vpop.f32.mrf.mxu1 }
 0x349   : > { %1272 = vst [vmem:[%s2110_s2 + $0x88] sm:$0xff] %v1248_v6  ;;  %v1276_v15 = vmul.f32 0.75, %v1248_v6  ;;  %v1293_v16 = vmul.f32 0.25, %v1248_v6 }
 0x380   : > { %v1251_v7 = vpop.f32.mrf.mxu1 }
 0x381   : > { %v1279_v10 = vmul.f32 0.25, %v1251_v7  ;;  %v1296_v11 = vmul.f32 0.75, %v1251_v7 }
 0x383   : > { %v1283_v12 = vadd.f32 %v1279_v10, %v1275_v8  ;;  %v1300_v13 = vadd.f32 %v1296_v11, %v1292_v9 }
 0x385   : > { %1568 = vst [vmem:[%s2110_s2 + $0x90] sm:$0xff] %v1283_v12 }
 0x386   : > { %1572 = vst [vmem:[%s2110_s2 + $0xa0] sm:$0xff] %v1300_v13 }
 0x388   : > { %v1254_v14 = vpop.f32.mrf.mxu1 }
 0x389   : > { %v1280_v17 = vmul.f32 0.25, %v1254_v14  ;;  %v1297_v18 = vmul.f32 0.75, %v1254_v14 }
 0x38b   : > { %v1284_v19 = vadd.f32 %v1280_v17, %v1276_v15  ;;  %v1301_v20 = vadd.f32 %v1297_v18, %v1293_v16 }
 0x38d   : > { %1569 = vst [vmem:[%s2110_s2 + $0x98] sm:$0xff] %v1284_v19 }
 0x38e   : > { %1573 = vst [vmem:[%s2110_s2 + $0xa8] sm:$0xff] %v1301_v20 }
 0x390   : > { %v1257_v21 = vpop.f32.mrf.mxu1 }
 0x391   : > { %v1309_v22 = vmul.f32 0.25, %v1257_v21  ;;  %v1322_v23 = vmul.f32 0.75, %v1257_v21 }
 0x393   : > { %v1313_v24 = vadd.f32 %v1309_v22, %v1296_v11  ;;  %v1326_v25 = vadd.f32 %v1322_v23, %v1279_v10 }
 0x395   : > { %1576 = vst [vmem:[%s2110_s2 + $0xb0] sm:$0xff] %v1313_v24 }
 0x396   : > { %1580 = vst [vmem:[%s2110_s2 + $0xc0] sm:$0xff] %v1326_v25 }
 0x398   : > { %v1260_v26 = vpop.f32.mrf.mxu1 }
 0x399   : > { %v1310_v27 = vmul.f32 0.25, %v1260_v26  ;;  %v1323_v28 = vmul.f32 0.75, %v1260_v26 }
 0x39b   : > { %v1314_v29 = vadd.f32 %v1310_v27, %v1297_v18  ;;  %v1327_v30 = vadd.f32 %v1323_v28, %v1280_v17 }
 0x39d   : > { %1577 = vst [vmem:[%s2110_s2 + $0xb8] sm:$0xff] %v1314_v29 }
 0x39e   : > { %1581 = vst [vmem:[%s2110_s2 + $0xc8] sm:$0xff] %v1327_v30 }
 0x3a0   : > { %v1263_v31 = vpop.f32.mrf.mxu1 }
 0x3a1   : > { %v1335_v32 = vmul.f32 0.25, %v1263_v31  ;;  %v1348_v33 = vmul.f32 0.75, %v1263_v31  ;;  %1592 = vst [vmem:[%s2110_s2 + $0xf0] sm:$0xff] %v1263_v31 }
 0x3a3   : > { %v1339_v34 = vadd.f32 %v1335_v32, %v1322_v23  ;;  %v1352_v35 = vadd.f32 %v1348_v33, %v1309_v22 }
 0x3a5   : > { %1584 = vst [vmem:[%s2110_s2 + $0xd0] sm:$0xff] %v1339_v34 }
 0x3a6   : > { %1588 = vst [vmem:[%s2110_s2 + $0xe0] sm:$0xff] %v1352_v35 }
 0x3a8   : > { %v1266_v36 = vpop.f32.mrf.mxu1 }
 0x3a9   : > { %v1336_v37 = vmul.f32 0.25, %v1266_v36  ;;  %v1349_v38 = vmul.f32 0.75, %v1266_v36  ;;  %1593 = vst [vmem:[%s2110_s2 + $0xf8] sm:$0xff] %v1266_v36 }
 0x3ab   : > { %v1340_v39 = vadd.f32 %v1336_v37, %v1323_v28  ;;  %v1353_v40 = vadd.f32 %v1349_v38, %v1310_v27 }
 0x3ad   : > { %1585 = vst [vmem:[%s2110_s2 + $0xd8] sm:$0xff] %v1340_v39 }
 0x3ae   : > { %1589 = vst [vmem:[%s2110_s2 + $0xe8] sm:$0xff] %v1353_v40 }
 0x3af   : > { %1795 = shalt.err (!%p1792_p8)
}
 0x3b0   : > { %s1844_s27 = smov 128   ;;  %s1845_s11 = smov 8  }
 0x3b1   : > { %1616 = dma.vmem_to_hbm [thread:$0]  (%p1918_p11), %s1379_s19, 4096, %s1381_s29, %s1365_s16, %s1844_s27, %s1844_s27, %s1845_s11  }
 0x3b2 PF: > { %p1638_p9 = scmp.ge.s32.totalorder %s1838_s15, 2  ;;  %s1395_s20 = sand.u32 1, %s1826_s12  }
 0x3b3   : > { %s1396_s30 = scalar_lea.sflag [#allocation4], %s1395_s20 }
 0x3b4   : > { %p1630_p10 = pnand %p1638_p9, %p1922_p12 }
 0x3b6   : > { %p1631_p1 = pneg %p1630_p10 }
 0x3b8   : > { %1821 = dma.done.wait (%p1631_p1), %s1396_s30, 4096  }
 0x3b9   : > { %1823 = vsyncadd (%p1631_p1), %s1396_s30, 4294963200  ;;  %p17_p0 = scmp.ge.s32.totalorder %s1891_s18, 6   ;;  %s2197_s12 = smov %s1830_s13 }
 0x3ba   : > { %s2198_s13 = smov %s1834_s14  ;;  %s2199_s14 = smov %s1903_s21 }
 0x3bb   : > { %s2200_s15 = smov %s1891_s18  ;;  %19 = sbr.rel (!%p17_p0) target bundleno = 9 (0x9), region = 92 }
 0x3c0   :  { %1402 = vsyncpa [#allocation3], 1 }
 0x3c1   :  { %1404 = vsyncpa [#allocation3 + $0x1], 1 }
 0x3c2   :  { %1405 = vsyncpa [#allocation6], 1 }
 0x3c3   :  { %1406 = vsyncpa [#allocation4], 1 }
 0x3c4   :  { %1408 = vsyncpa [#allocation4 + $0x1], 1 }

</bundles_post_ra>
